<compile_context>
chip_gen: v5e
topology: v5e:2x2
jax: 0.10.0
libtpu: 0.0.40
codegen_flags: <defaults>
</compile_context>

<pallas_src>
import functools

import jax
import jax.numpy as jnp
import numpy as np
from jax.experimental import pallas as pl
from jax.experimental.pallas import tpu as pltpu

_SUBLANE = 8
_LANE = 128


def _round_up(x, m):
    return (x + m - 1) // m * m


# ----------------------------------------------------------------------------
# Kernel: one grid step == one LSTM decode step over all L layers + vocab proj.
# ----------------------------------------------------------------------------
def _decoder_lstm_kernel(L, dim,
                         x_ref, h0_ref, c0_ref, w_ref, b_ref, wc_ref, bc_ref,
                         char_ref, hid_ref, hn_ref, cn_ref):
    """x_ref: (1,B,in_dim); h0/c0/hn/cn: (L,B,dim); w_ref: (L,in_max+dim,4*dim);
    b_ref: (L,4*dim); wc_ref: (dim,vocab_pad); bc_ref: (1,vocab_pad);
    char_ref: (1,B,vocab_pad); hid_ref: (1,B,hid_pad)."""
    in_max = w_ref.shape[1] - dim
    hid_pad = hid_ref.shape[2]
    wdtype = w_ref.dtype

    # State outputs are grid-resident (constant index map); seed them from the
    # provided initial state on the first decode step only.
    @pl.when(pl.program_id(0) == 0)
    def _init():
        hn_ref[...] = h0_ref[...]
        cn_ref[...] = c0_ref[...]

    layer_in = x_ref[0]                                   # (B, in_dim) f32
    for l in range(L):                                    # L tiny & static -> unrolled
        h_prev = hn_ref[l]                                # (B, dim)
        c_prev = cn_ref[l]
        if layer_in.shape[1] < in_max:                    # only if input_dim < dim
            layer_in = jnp.concatenate(
                [layer_in,
                 jnp.zeros((layer_in.shape[0], in_max - layer_in.shape[1]),
                           layer_in.dtype)], axis=-1)
        cat = jnp.concatenate([layer_in, h_prev], axis=-1)        # (B, in_max+dim)
        gates = jnp.dot(cat.astype(wdtype), w_ref[l],
                        preferred_element_type=jnp.float32)       # (B, 4*dim) f32
        gates = gates + b_ref[pl.ds(l, 1), :]                     # bias kept f32

        # Full-vreg nonlinearities (2 EUP passes), then lane slices (XLU).
        sig = jax.nn.sigmoid(gates)
        th = jnp.tanh(gates)
        i_g = sig[:, 0:dim]
        f_g = sig[:, dim:2 * dim]
        g_g = th[:, 2 * dim:3 * dim]
        o_g = sig[:, 3 * dim:4 * dim]

        c_new = f_g * c_prev + i_g * g_g
        h_new = o_g * jnp.tanh(c_new)
        hn_ref[l] = h_new
        cn_ref[l] = c_new
        layer_in = h_new
        # TODO(synk): inter-layer dropout (training-mode only) not applied;
        # this kernel implements eval-mode semantics (final Dropout = identity).

    # Lane-dense hidden output (unmasked stores); caller slices back to dim.
    if hid_pad > dim:
        hid_out = jnp.concatenate(
            [layer_in,
             jnp.zeros((layer_in.shape[0], hid_pad - dim), layer_in.dtype)],
            axis=-1)
    else:
        hid_out = layer_in
    hid_ref[0] = hid_out
    char_ref[0] = (jnp.dot(layer_in.astype(wc_ref.dtype), wc_ref[...],
                           preferred_element_type=jnp.float32)
                   + bc_ref[...])


# ----------------------------------------------------------------------------
# pallas_call wrapper (T decode steps in one kernel, weights resident in VMEM)
# ----------------------------------------------------------------------------
def _decoder_call_impl(xs, h0, c0, w_pack, b_pack, w_char, b_char):
    T, Bp, in_dim = xs.shape
    L, _, dim = h0.shape
    vocab_pad = w_char.shape[1]
    hid_pad = _round_up(dim, _LANE)

    kernel = functools.partial(_decoder_lstm_kernel, L, dim)

    step3 = lambda t: (t, 0, 0)
    const3 = lambda t: (0, 0, 0)
    const2 = lambda t: (0, 0)

    out_shape = (
        jax.ShapeDtypeStruct((T, Bp, vocab_pad), jnp.float32),  # char logits (padded)
        jax.ShapeDtypeStruct((T, Bp, hid_pad), jnp.float32),    # last-layer hidden (padded)
        jax.ShapeDtypeStruct((L, Bp, dim), jnp.float32),        # new h
        jax.ShapeDtypeStruct((L, Bp, dim), jnp.float32),        # new c
    )

    return pl.pallas_call(
        kernel,
        grid=(T,),
        in_specs=[
            pl.BlockSpec((1, Bp, in_dim), step3),       # x for step t (pipelined)
            pl.BlockSpec((L, Bp, dim), const3),         # h0  (loaded once)
            pl.BlockSpec((L, Bp, dim), const3),         # c0  (loaded once)
            pl.BlockSpec(w_pack.shape, const3),         # packed LSTM weights (resident)
            pl.BlockSpec(b_pack.shape, const2),         # packed biases (resident)
            pl.BlockSpec(w_char.shape, const2),         # char projection (resident)
            pl.BlockSpec(b_char.shape, const2),
        ],
        out_specs=(
            pl.BlockSpec((1, Bp, vocab_pad), step3),    # lane-dense (128-wide) logits
            pl.BlockSpec((1, Bp, hid_pad), step3),      # lane-dense hidden
            pl.BlockSpec((L, Bp, dim), const3),         # resident state accumulator
            pl.BlockSpec((L, Bp, dim), const3),
        ),
        out_shape=out_shape,
        input_output_aliases={1: 2, 2: 3},              # h0 -> h_new, c0 -> c_new
        compiler_params=pltpu.CompilerParams(
            dimension_semantics=("arbitrary",)),        # steps are sequential (carry)
    )(xs, h0, c0, w_pack, b_pack, w_char, b_char)


_decoder_call_jit = jax.jit(_decoder_call_impl)


# ----------------------------------------------------------------------------
# Public wrappers
# ----------------------------------------------------------------------------
def decoder_init_state(bs, layer, dim):
    """Zero state, batch padded once to the sublane height (kept padded)."""
    bp = _round_up(max(bs, 1), _SUBLANE)
    return (jnp.zeros((layer, bp, dim), jnp.float32),
            jnp.zeros((layer, bp, dim), jnp.float32))


def decoder_forward(x, hidden_state, params):
    """Single step == Decoder.forward (eval). x: (B, input_dim); state padded."""
    h0, c0 = hidden_state
    B, in_dim = x.shape
    Bp = h0.shape[1]
    vocab, dim = params["vocab"], params["dim"]
    xs = jnp.zeros((1, Bp, in_dim), x.dtype).at[0, :B].set(x)
    char_seq, hid_seq, h_new, c_new = _decoder_call_jit(
        xs, h0, c0, params["w_pack"], params["b_pack"],
        params["w_char_pad"], params["b_char_pad"])
    return char_seq[0, :B, :vocab], hid_seq[0, :B, :dim], (h_new, c_new)


def decoder_forward_steps(xs, hidden_state, params):
    """T sequential decode steps in ONE pallas_call (teacher-forcing inputs).
    Per-step math is identical to calling Decoder.forward T times."""
    h0, c0 = hidden_state
    T, B, in_dim = xs.shape
    Bp = h0.shape[1]
    vocab, dim = params["vocab"], params["dim"]
    xs_p = jnp.zeros((T, Bp, in_dim), xs.dtype).at[:, :B].set(xs)
    char_seq, hid_seq, h_new, c_new = _decoder_call_jit(
        xs_p, h0, c0, params["w_pack"], params["b_pack"],
        params["w_char_pad"], params["b_char_pad"])
    return char_seq[:, :B, :vocab], hid_seq[:, :B, :dim], (h_new, c_new)


# ----------------------------------------------------------------------------
# Parameters (PyTorch-style init), packed for the kernel
# ----------------------------------------------------------------------------
def _make_params(key, input_dim, dim, layer, vocab):
    bound = 1.0 / np.sqrt(dim)
    in_max = max(input_dim, dim)
    w_pack = jnp.zeros((layer, in_max + dim, 4 * dim), jnp.float32)
    b_pack = jnp.zeros((layer, 4 * dim), jnp.float32)
    for l in range(layer):
        in_l = input_dim if l == 0 else dim
        key, k1, k2, k3, k4 = jax.random.split(key, 5)
        w_ih = jax.random.uniform(k1, (4 * dim, in_l), jnp.float32, -bound, bound)
        w_hh = jax.random.uniform(k2, (4 * dim, dim), jnp.float32, -bound, bound)
        b_ih = jax.random.uniform(k3, (4 * dim,), jnp.float32, -bound, bound)
        b_hh = jax.random.uniform(k4, (4 * dim,), jnp.float32, -bound, bound)
        w_pack = w_pack.at[l, :in_l, :].set(w_ih.T)          # input rows
        w_pack = w_pack.at[l, in_max:, :].set(w_hh.T)        # hidden rows
        b_pack = b_pack.at[l].set(b_ih + b_hh)
    key, k1, k2 = jax.random.split(key, 3)
    w_char = jax.random.uniform(k1, (vocab, dim), jnp.float32, -bound, bound)
    b_char = jax.random.uniform(k2, (vocab,), jnp.float32, -bound, bound)
    vocab_pad = _round_up(vocab, _LANE)
    w_char_pad = jnp.zeros((dim, vocab_pad), jnp.float32).at[:, :vocab].set(w_char.T)
    b_char_pad = jnp.zeros((1, vocab_pad), jnp.float32).at[0, :vocab].set(b_char)
    return {"w_pack": w_pack, "b_pack": b_pack,
            "w_char_pad": w_char_pad, "b_char_pad": b_char_pad,
            "vocab": vocab, "dim": dim, "layer": layer, "input_dim": input_dim}


def cast_weights(params, dtype):
    """bf16 weight storage (v6e/v7x); biases + elementwise math stay f32."""
    p = dict(params)
    p["w_pack"] = params["w_pack"].astype(dtype)
    p["w_char_pad"] = params["w_char_pad"].astype(dtype)
    return p


# ----------------------------------------------------------------------------
# Pure-JAX reference (one step), f32
# ----------------------------------------------------------------------------
def _reference_forward_step(x, state, params, dim):
    h0, c0 = state
    L = h0.shape[0]
    in_max = params["w_pack"].shape[1] - dim
    layer_in = x
    h_new, c_new = [], []
    for l in range(L):
        li = layer_in
        if li.shape[1] < in_max:
            li = jnp.pad(li, ((0, 0), (0, in_max - li.shape[1])))
        cat = jnp.concatenate([li, h0[l]], axis=-1)
        gates = cat @ params["w_pack"][l] + params["b_pack"][l]
        i_g = jax.nn.sigmoid(gates[:, :dim])
        f_g = jax.nn.sigmoid(gates[:, dim:2 * dim])
        g_g = jnp.tanh(gates[:, 2 * dim:3 * dim])
        o_g = jax.nn.sigmoid(gates[:, 3 * dim:])
        c_l = f_g * c0[l] + i_g * g_g
        h_l = o_g * jnp.tanh(c_l)
        h_new.append(h_l)
        c_new.append(c_l)
        layer_in = h_l
    char = layer_in @ params["w_char_pad"] + params["b_char_pad"][0]
    return char[:, :params["vocab"]], layer_in, (jnp.stack(h_new), jnp.stack(c_new))


if __name__ == "__main__":
    # Decoder(input_dim=32, vocab=48, module='LSTM', dim=32, layer=2, dropout=0.1)
    B, INPUT_DIM, DIM, LAYER, VOCAB = 2, 32, 32, 2, 48
    T = 6

    key = jax.random.PRNGKey(0)
    key, kx, kxs = jax.random.split(key, 3)
    x = jax.random.normal(kx, (B, INPUT_DIM), jnp.float32)
    xs = jax.random.normal(kxs, (T, B, INPUT_DIM), jnp.float32)

    params = _make_params(key, INPUT_DIM, DIM, LAYER, VOCAB)

    # References (pure JAX, f32, unpadded batch) computed first.
    h0_r = jnp.zeros((LAYER, B, DIM), jnp.float32)
    c0_r = jnp.zeros((LAYER, B, DIM), jnp.float32)
    char_r, hid_r, (hn_r, cn_r) = _reference_forward_step(x, (h0_r, c0_r), params, DIM)

    st = (h0_r, c0_r)
    chars_ref, hids_ref = [], []
    for t in range(T):
        cr, hr, st = _reference_forward_step(xs[t], st, params, DIM)
        chars_ref.append(cr)
        hids_ref.append(hr)
    chars_ref = jnp.stack(chars_ref)
    hids_ref = jnp.stack(hids_ref)
    hn_seq_r, cn_seq_r = st

    # --- 1) single-step kernel (init_state == zeros), f32 weights ---
    state0 = decoder_init_state(B, LAYER, DIM)
    char, hid, (hn, cn) = decoder_forward(x, state0, params)
    jax.block_until_ready((char, hid, hn, cn))
    np.testing.assert_allclose(np.asarray(char), np.asarray(char_r), rtol=1e-4, atol=1e-4)
    np.testing.assert_allclose(np.asarray(hid), np.asarray(hid_r), rtol=1e-4, atol=1e-4)
    np.testing.assert_allclose(np.asarray(hn[:, :B]), np.asarray(hn_r), rtol=1e-4, atol=1e-4)
    np.testing.assert_allclose(np.asarray(cn[:, :B]), np.asarray(cn_r), rtol=1e-4, atol=1e-4)

    # --- 2) multi-step kernel (T steps in one pallas_call), f32 weights ---
    state0 = decoder_init_state(B, LAYER, DIM)
    char_seq, hid_seq, (hn_m, cn_m) = decoder_forward_steps(xs, state0, params)
    jax.block_until_ready((char_seq, hid_seq, hn_m, cn_m))
    np.testing.assert_allclose(np.asarray(char_seq), np.asarray(chars_ref), rtol=1e-4, atol=1e-4)
    np.testing.assert_allclose(np.asarray(hid_seq), np.asarray(hids_ref), rtol=1e-4, atol=1e-4)
    np.testing.assert_allclose(np.asarray(hn_m[:, :B]), np.asarray(hn_seq_r), rtol=1e-4, atol=1e-4)
    np.testing.assert_allclose(np.asarray(cn_m[:, :B]), np.asarray(cn_seq_r), rtol=1e-4, atol=1e-4)

    # --- 3) bf16 weight storage (v6e/v7x-friendly), f32 accumulate/elementwise ---
    params_bf16 = cast_weights(params, jnp.bfloat16)
    state0 = decoder_init_state(B, LAYER, DIM)
    char_b, hid_b, _ = decoder_forward_steps(xs, state0, params_bf16)
    jax.block_until_ready((char_b, hid_b))
    np.testing.assert_allclose(np.asarray(char_b), np.asarray(chars_ref), rtol=1e-1, atol=1e-1)
    np.testing.assert_allclose(np.asarray(hid_b), np.asarray(hids_ref), rtol=1e-1, atol=1e-1)

    print("KERNEL_OK")
</pallas_src>

<mosaic_0001>
module attributes {stable_mosaic.version = 11 : i64} {
  func.func @_decoder_lstm_kernel(%arg0: i32, %arg1: memref<1x8x32xf32, #tpu.memory_space<vmem>>, %arg2: memref<2x8x32xf32, #tpu.memory_space<vmem>>, %arg3: memref<2x8x32xf32, #tpu.memory_space<vmem>>, %arg4: memref<2x64x128xf32, #tpu.memory_space<vmem>>, %arg5: memref<2x128xf32, #tpu.memory_space<vmem>>, %arg6: memref<32x128xf32, #tpu.memory_space<vmem>>, %arg7: memref<1x128xf32, #tpu.memory_space<vmem>>, %arg8: memref<1x8x128xf32, #tpu.memory_space<vmem>>, %arg9: memref<1x8x128xf32, #tpu.memory_space<vmem>>, %arg10: memref<2x8x32xf32, #tpu.memory_space<vmem>>, %arg11: memref<2x8x32xf32, #tpu.memory_space<vmem>>) attributes {dimension_semantics = [#tpu.dimension_semantics<arbitrary>], iteration_bounds = array<i64: 1>, scalar_prefetch = 0 : i64, scratch_operands = 0 : i64, tpu.core_type = #tpu.core_type<tc>, window_params = [{transform_indices = @transform_0, window_bounds = array<i64: 1, 8, 32>}, {pipeline_mode = #tpu.pipeline_mode<synchronous>, transform_indices = @transform_1, window_bounds = array<i64: 2, 8, 32>}, {pipeline_mode = #tpu.pipeline_mode<synchronous>, transform_indices = @transform_2, window_bounds = array<i64: 2, 8, 32>}, {pipeline_mode = #tpu.pipeline_mode<synchronous>, transform_indices = @transform_3, window_bounds = array<i64: 2, 64, 128>}, {pipeline_mode = #tpu.pipeline_mode<synchronous>, transform_indices = @transform_4, window_bounds = array<i64: 2, 128>}, {pipeline_mode = #tpu.pipeline_mode<synchronous>, transform_indices = @transform_5, window_bounds = array<i64: 32, 128>}, {pipeline_mode = #tpu.pipeline_mode<synchronous>, transform_indices = @transform_6, window_bounds = array<i64: 1, 128>}, {transform_indices = @transform_7, window_bounds = array<i64: 1, 8, 128>}, {transform_indices = @transform_8, window_bounds = array<i64: 1, 8, 128>}, {pipeline_mode = #tpu.pipeline_mode<synchronous>, transform_indices = @transform_9, window_bounds = array<i64: 2, 8, 32>}, {pipeline_mode = #tpu.pipeline_mode<synchronous>, transform_indices = @transform_10, window_bounds = array<i64: 2, 8, 32>}]} {
    %c0_i32 = arith.constant 0 : i32
    %0 = arith.cmpi eq, %arg0, %c0_i32 : i32
    %1 = arith.extui %0 : i1 to i32
    %c0_i32_0 = arith.constant 0 : i32
    %2 = arith.cmpi ne, %1, %c0_i32_0 : i32
    scf.if %2 {
      %c0_51 = arith.constant 0 : index
      %c0_52 = arith.constant 0 : index
      %c0_53 = arith.constant 0 : index
      %82 = vector.load %arg2[%c0_51, %c0_52, %c0_53] : memref<2x8x32xf32, #tpu.memory_space<vmem>>, vector<2x8x32xf32>
      %c0_54 = arith.constant 0 : index
      %c0_55 = arith.constant 0 : index
      %c0_56 = arith.constant 0 : index
      %83 = vector.load %arg10[%c0_54, %c0_55, %c0_56] : memref<2x8x32xf32, #tpu.memory_space<vmem>>, vector<2x8x32xf32>
      tpu.vector_store %arg10[%c0_54, %c0_55, %c0_56], %82 {strides = array<i32>} : memref<2x8x32xf32, #tpu.memory_space<vmem>>, vector<2x8x32xf32>,
      %c0_57 = arith.constant 0 : index
      %c0_58 = arith.constant 0 : index
      %c0_59 = arith.constant 0 : index
      %84 = vector.load %arg3[%c0_57, %c0_58, %c0_59] : memref<2x8x32xf32, #tpu.memory_space<vmem>>, vector<2x8x32xf32>
      %c0_60 = arith.constant 0 : index
      %c0_61 = arith.constant 0 : index
      %c0_62 = arith.constant 0 : index
      %85 = vector.load %arg11[%c0_60, %c0_61, %c0_62] : memref<2x8x32xf32, #tpu.memory_space<vmem>>, vector<2x8x32xf32>
      tpu.vector_store %arg11[%c0_60, %c0_61, %c0_62], %84 {strides = array<i32>} : memref<2x8x32xf32, #tpu.memory_space<vmem>>, vector<2x8x32xf32>,
    } else {
    }
    %c0 = arith.constant 0 : index
    %c0_1 = arith.constant 0 : index
    %c0_2 = arith.constant 0 : index
    %3 = vector.load %arg1[%c0, %c0_1, %c0_2] : memref<1x8x32xf32, #tpu.memory_space<vmem>>, vector<1x8x32xf32>
    %4 = vector.shape_cast %3 : vector<1x8x32xf32> to vector<8x32xf32>
    %c0_3 = arith.constant 0 : index
    %c0_4 = arith.constant 0 : index
    %c0_5 = arith.constant 0 : index
    %5 = vector.load %arg10[%c0_3, %c0_4, %c0_5] : memref<2x8x32xf32, #tpu.memory_space<vmem>>, vector<1x8x32xf32>
    %6 = vector.shape_cast %5 : vector<1x8x32xf32> to vector<8x32xf32>
    %c0_6 = arith.constant 0 : index
    %c0_7 = arith.constant 0 : index
    %c0_8 = arith.constant 0 : index
    %7 = vector.load %arg11[%c0_6, %c0_7, %c0_8] : memref<2x8x32xf32, #tpu.memory_space<vmem>>, vector<1x8x32xf32>
    %8 = vector.shape_cast %7 : vector<1x8x32xf32> to vector<8x32xf32>
    %9 = tpu.concatenate %4, %6 in 1 : vector<8x32xf32>, vector<8x32xf32> -> vector<8x64xf32>
    %c0_9 = arith.constant 0 : index
    %c0_10 = arith.constant 0 : index
    %c0_11 = arith.constant 0 : index
    %10 = vector.load %arg4[%c0_9, %c0_10, %c0_11] : memref<2x64x128xf32, #tpu.memory_space<vmem>>, vector<1x64x128xf32>
    %11 = vector.shape_cast %10 : vector<1x64x128xf32> to vector<64x128xf32>
    %cst = arith.constant dense<0.000000e+00> : vector<8x128xf32>
    %12 = tpu.matmul %9, %11, %cst {dimension_numbers = #tpu.dot_dimension_numbers<[1], [0], [0], [1], [0, 0, 1, 1], [], []>} : vector<8x64xf32>, vector<64x128xf32>, vector<8x128xf32> -> vector<8x128xf32>
    %c0_12 = arith.constant 0 : index
    %c0_13 = arith.constant 0 : index
    %13 = vector.load %arg5[%c0_12, %c0_13] : memref<2x128xf32, #tpu.memory_space<vmem>>, vector<1x128xf32>
    %14 = vector.broadcast %13 : vector<1x128xf32> to vector<8x128xf32>
    %15 = arith.addf %12, %14 : vector<8x128xf32>
    %16 = arith.negf %15 : vector<8x128xf32>
    %17 = math.exp %16 : vector<8x128xf32>
    %cst_14 = arith.constant 1.000000e+00 : f32
    %18 = vector.broadcast %cst_14 : f32 to vector<8x128xf32>
    %19 = arith.addf %18, %17 : vector<8x128xf32>
    %20 = arith.divf %18, %19 : vector<8x128xf32>
    %21 = math.tanh %15 : vector<8x128xf32>
    %22 = vector.extract_strided_slice %20 {offsets = [0, 0], sizes = [8, 32], strides = [1, 1]} : vector<8x128xf32> to vector<8x32xf32>
    %23 = vector.extract_strided_slice %20 {offsets = [0, 32], sizes = [8, 32], strides = [1, 1]} : vector<8x128xf32> to vector<8x32xf32>
    %24 = vector.extract_strided_slice %21 {offsets = [0, 64], sizes = [8, 32], strides = [1, 1]} : vector<8x128xf32> to vector<8x32xf32>
    %25 = vector.extract_strided_slice %20 {offsets = [0, 96], sizes = [8, 32], strides = [1, 1]} : vector<8x128xf32> to vector<8x32xf32>
    %26 = arith.mulf %23, %8 : vector<8x32xf32>
    %27 = arith.mulf %22, %24 : vector<8x32xf32>
    %28 = arith.addf %26, %27 : vector<8x32xf32>
    %29 = math.tanh %28 : vector<8x32xf32>
    %30 = arith.mulf %25, %29 : vector<8x32xf32>
    %c0_15 = arith.constant 0 : index
    %c0_16 = arith.constant 0 : index
    %c0_17 = arith.constant 0 : index
    %31 = vector.load %arg10[%c0_15, %c0_16, %c0_17] : memref<2x8x32xf32, #tpu.memory_space<vmem>>, vector<1x8x32xf32>
    %32 = vector.shape_cast %31 : vector<1x8x32xf32> to vector<8x32xf32>
    %33 = vector.shape_cast %30 : vector<8x32xf32> to vector<1x8x32xf32>
    tpu.vector_store %arg10[%c0_15, %c0_16, %c0_17], %33 {strides = array<i32>} : memref<2x8x32xf32, #tpu.memory_space<vmem>>, vector<1x8x32xf32>,
    %c0_18 = arith.constant 0 : index
    %c0_19 = arith.constant 0 : index
    %c0_20 = arith.constant 0 : index
    %34 = vector.load %arg11[%c0_18, %c0_19, %c0_20] : memref<2x8x32xf32, #tpu.memory_space<vmem>>, vector<1x8x32xf32>
    %35 = vector.shape_cast %34 : vector<1x8x32xf32> to vector<8x32xf32>
    %36 = vector.shape_cast %28 : vector<8x32xf32> to vector<1x8x32xf32>
    tpu.vector_store %arg11[%c0_18, %c0_19, %c0_20], %36 {strides = array<i32>} : memref<2x8x32xf32, #tpu.memory_space<vmem>>, vector<1x8x32xf32>,
    %c1 = arith.constant 1 : index
    %c0_21 = arith.constant 0 : index
    %c0_22 = arith.constant 0 : index
    %37 = vector.load %arg10[%c1, %c0_21, %c0_22] : memref<2x8x32xf32, #tpu.memory_space<vmem>>, vector<1x8x32xf32>
    %38 = vector.shape_cast %37 : vector<1x8x32xf32> to vector<8x32xf32>
    %c1_23 = arith.constant 1 : index
    %c0_24 = arith.constant 0 : index
    %c0_25 = arith.constant 0 : index
    %39 = vector.load %arg11[%c1_23, %c0_24, %c0_25] : memref<2x8x32xf32, #tpu.memory_space<vmem>>, vector<1x8x32xf32>
    %40 = vector.shape_cast %39 : vector<1x8x32xf32> to vector<8x32xf32>
    %41 = tpu.concatenate %30, %38 in 1 : vector<8x32xf32>, vector<8x32xf32> -> vector<8x64xf32>
    %c1_26 = arith.constant 1 : index
    %c0_27 = arith.constant 0 : index
    %c0_28 = arith.constant 0 : index
    %42 = vector.load %arg4[%c1_26, %c0_27, %c0_28] : memref<2x64x128xf32, #tpu.memory_space<vmem>>, vector<1x64x128xf32>
    %43 = vector.shape_cast %42 : vector<1x64x128xf32> to vector<64x128xf32>
    %cst_29 = arith.constant dense<0.000000e+00> : vector<8x128xf32>
    %44 = tpu.matmul %41, %43, %cst_29 {dimension_numbers = #tpu.dot_dimension_numbers<[1], [0], [0], [1], [0, 0, 1, 1], [], []>} : vector<8x64xf32>, vector<64x128xf32>, vector<8x128xf32> -> vector<8x128xf32>
    %c1_30 = arith.constant 1 : index
    %c0_31 = arith.constant 0 : index
    %45 = vector.load %arg5[%c1_30, %c0_31] : memref<2x128xf32, #tpu.memory_space<vmem>>, vector<1x128xf32>
    %46 = vector.broadcast %45 : vector<1x128xf32> to vector<8x128xf32>
    %47 = arith.addf %44, %46 : vector<8x128xf32>
    %48 = arith.negf %47 : vector<8x128xf32>
    %49 = math.exp %48 : vector<8x128xf32>
    %cst_32 = arith.constant 1.000000e+00 : f32
    %50 = vector.broadcast %cst_32 : f32 to vector<8x128xf32>
    %51 = arith.addf %50, %49 : vector<8x128xf32>
    %52 = arith.divf %50, %51 : vector<8x128xf32>
    %53 = math.tanh %47 : vector<8x128xf32>
    %54 = vector.extract_strided_slice %52 {offsets = [0, 0], sizes = [8, 32], strides = [1, 1]} : vector<8x128xf32> to vector<8x32xf32>
    %55 = vector.extract_strided_slice %52 {offsets = [0, 32], sizes = [8, 32], strides = [1, 1]} : vector<8x128xf32> to vector<8x32xf32>
    %56 = vector.extract_strided_slice %53 {offsets = [0, 64], sizes = [8, 32], strides = [1, 1]} : vector<8x128xf32> to vector<8x32xf32>
    %57 = vector.extract_strided_slice %52 {offsets = [0, 96], sizes = [8, 32], strides = [1, 1]} : vector<8x128xf32> to vector<8x32xf32>
    %58 = arith.mulf %55, %40 : vector<8x32xf32>
    %59 = arith.mulf %54, %56 : vector<8x32xf32>
    %60 = arith.addf %58, %59 : vector<8x32xf32>
    %61 = math.tanh %60 : vector<8x32xf32>
    %62 = arith.mulf %57, %61 : vector<8x32xf32>
    %c1_33 = arith.constant 1 : index
    %c0_34 = arith.constant 0 : index
    %c0_35 = arith.constant 0 : index
    %63 = vector.load %arg10[%c1_33, %c0_34, %c0_35] : memref<2x8x32xf32, #tpu.memory_space<vmem>>, vector<1x8x32xf32>
    %64 = vector.shape_cast %63 : vector<1x8x32xf32> to vector<8x32xf32>
    %65 = vector.shape_cast %62 : vector<8x32xf32> to vector<1x8x32xf32>
    tpu.vector_store %arg10[%c1_33, %c0_34, %c0_35], %65 {strides = array<i32>} : memref<2x8x32xf32, #tpu.memory_space<vmem>>, vector<1x8x32xf32>,
    %c1_36 = arith.constant 1 : index
    %c0_37 = arith.constant 0 : index
    %c0_38 = arith.constant 0 : index
    %66 = vector.load %arg11[%c1_36, %c0_37, %c0_38] : memref<2x8x32xf32, #tpu.memory_space<vmem>>, vector<1x8x32xf32>
    %67 = vector.shape_cast %66 : vector<1x8x32xf32> to vector<8x32xf32>
    %68 = vector.shape_cast %60 : vector<8x32xf32> to vector<1x8x32xf32>
    tpu.vector_store %arg11[%c1_36, %c0_37, %c0_38], %68 {strides = array<i32>} : memref<2x8x32xf32, #tpu.memory_space<vmem>>, vector<1x8x32xf32>,
    %cst_39 = arith.constant 0.000000e+00 : f32
    %69 = vector.broadcast %cst_39 : f32 to vector<8x96xf32>
    %70 = tpu.concatenate %62, %69 in 1 : vector<8x32xf32>, vector<8x96xf32> -> vector<8x128xf32>
    %c0_40 = arith.constant 0 : index
    %c0_41 = arith.constant 0 : index
    %c0_42 = arith.constant 0 : index
    %71 = vector.load %arg9[%c0_40, %c0_41, %c0_42] : memref<1x8x128xf32, #tpu.memory_space<vmem>>, vector<1x8x128xf32>
    %72 = vector.shape_cast %71 : vector<1x8x128xf32> to vector<8x128xf32>
    %73 = vector.shape_cast %70 : vector<8x128xf32> to vector<1x8x128xf32>
    tpu.vector_store %arg9[%c0_40, %c0_41, %c0_42], %73 {strides = array<i32>} : memref<1x8x128xf32, #tpu.memory_space<vmem>>, vector<1x8x128xf32>,
    %c0_43 = arith.constant 0 : index
    %c0_44 = arith.constant 0 : index
    %74 = vector.load %arg6[%c0_43, %c0_44] : memref<32x128xf32, #tpu.memory_space<vmem>>, vector<32x128xf32>
    %cst_45 = arith.constant dense<0.000000e+00> : vector<8x128xf32>
    %75 = tpu.matmul %62, %74, %cst_45 {dimension_numbers = #tpu.dot_dimension_numbers<[1], [0], [0], [1], [0, 0, 1, 1], [], []>} : vector<8x32xf32>, vector<32x128xf32>, vector<8x128xf32> -> vector<8x128xf32>
    %c0_46 = arith.constant 0 : index
    %c0_47 = arith.constant 0 : index
    %76 = vector.load %arg7[%c0_46, %c0_47] : memref<1x128xf32, #tpu.memory_space<vmem>>, vector<1x128xf32>
    %77 = vector.broadcast %76 : vector<1x128xf32> to vector<8x128xf32>
    %78 = arith.addf %75, %77 : vector<8x128xf32>
    %c0_48 = arith.constant 0 : index
    %c0_49 = arith.constant 0 : index
    %c0_50 = arith.constant 0 : index
    %79 = vector.load %arg8[%c0_48, %c0_49, %c0_50] : memref<1x8x128xf32, #tpu.memory_space<vmem>>, vector<1x8x128xf32>
    %80 = vector.shape_cast %79 : vector<1x8x128xf32> to vector<8x128xf32>
    %81 = vector.shape_cast %78 : vector<8x128xf32> to vector<1x8x128xf32>
    tpu.vector_store %arg8[%c0_48, %c0_49, %c0_50], %81 {strides = array<i32>} : memref<1x8x128xf32, #tpu.memory_space<vmem>>, vector<1x8x128xf32>,
    return
  }
  func.func @transform_0(%arg0: i32) -> (i32, i32, i32) {
    %c0_i32 = arith.constant 0 : i32
    %c0_i32_0 = arith.constant 0 : i32
    %c0_i32_1 = arith.constant 0 : i32
    return %arg0, %c0_i32, %c0_i32_0 : i32, i32, i32
  }
  func.func @transform_1(%arg0: i32) -> (i32, i32, i32) {
    %c0_i32 = arith.constant 0 : i32
    %c0_i32_0 = arith.constant 0 : i32
    %c0_i32_1 = arith.constant 0 : i32
    %c0_i32_2 = arith.constant 0 : i32
    return %c0_i32, %c0_i32_0, %c0_i32_1 : i32, i32, i32
  }
  func.func @transform_2(%arg0: i32) -> (i32, i32, i32) {
    %c0_i32 = arith.constant 0 : i32
    %c0_i32_0 = arith.constant 0 : i32
    %c0_i32_1 = arith.constant 0 : i32
    %c0_i32_2 = arith.constant 0 : i32
    return %c0_i32, %c0_i32_0, %c0_i32_1 : i32, i32, i32
  }
  func.func @transform_3(%arg0: i32) -> (i32, i32, i32) {
    %c0_i32 = arith.constant 0 : i32
    %c0_i32_0 = arith.constant 0 : i32
    %c0_i32_1 = arith.constant 0 : i32
    %c0_i32_2 = arith.constant 0 : i32
    return %c0_i32, %c0_i32_0, %c0_i32_1 : i32, i32, i32
  }
  func.func @transform_4(%arg0: i32) -> (i32, i32) {
    %c0_i32 = arith.constant 0 : i32
    %c0_i32_0 = arith.constant 0 : i32
    %c0_i32_1 = arith.constant 0 : i32
    return %c0_i32, %c0_i32_0 : i32, i32
  }
  func.func @transform_5(%arg0: i32) -> (i32, i32) {
    %c0_i32 = arith.constant 0 : i32
    %c0_i32_0 = arith.constant 0 : i32
    %c0_i32_1 = arith.constant 0 : i32
    return %c0_i32, %c0_i32_0 : i32, i32
  }
  func.func @transform_6(%arg0: i32) -> (i32, i32) {
    %c0_i32 = arith.constant 0 : i32
    %c0_i32_0 = arith.constant 0 : i32
    %c0_i32_1 = arith.constant 0 : i32
    return %c0_i32, %c0_i32_0 : i32, i32
  }
  func.func @transform_7(%arg0: i32) -> (i32, i32, i32) {
    %c0_i32 = arith.constant 0 : i32
    %c0_i32_0 = arith.constant 0 : i32
    %c0_i32_1 = arith.constant 0 : i32
    return %arg0, %c0_i32, %c0_i32_0 : i32, i32, i32
  }
  func.func @transform_8(%arg0: i32) -> (i32, i32, i32) {
    %c0_i32 = arith.constant 0 : i32
    %c0_i32_0 = arith.constant 0 : i32
    %c0_i32_1 = arith.constant 0 : i32
    return %arg0, %c0_i32, %c0_i32_0 : i32, i32, i32
  }
  func.func @transform_9(%arg0: i32) -> (i32, i32, i32) {
    %c0_i32 = arith.constant 0 : i32
    %c0_i32_0 = arith.constant 0 : i32
    %c0_i32_1 = arith.constant 0 : i32
    %c0_i32_2 = arith.constant 0 : i32
    return %c0_i32, %c0_i32_0, %c0_i32_1 : i32, i32, i32
  }
  func.func @transform_10(%arg0: i32) -> (i32, i32, i32) {
    %c0_i32 = arith.constant 0 : i32
    %c0_i32_0 = arith.constant 0 : i32
    %c0_i32_1 = arith.constant 0 : i32
    %c0_i32_2 = arith.constant 0 : i32
    return %c0_i32, %c0_i32_0, %c0_i32_1 : i32, i32, i32
  }
}

</mosaic_0001>

<bundles_post_ra>
// kernel: _decoder_call_impl.1
= control target key start
LH: loop header
LB: loop body
LE: loop exit
PB: predicated region body
PF: predicated region fallthrough
CT: control target
= control target key end

     0   :  { %16 = vsyncpa [#allocation3], 0  ;;  %s750_s0 = inlined_call_operand.vmem [shape: f32[1,8,32], index: 0, kind: input, shape index: {}]   ;;  %s751_s1 = inlined_call_operand.hbm [shape: f32[2,8,32], index: 1, kind: input, shape index: {}, may-alias: {1,9}]   ;;  %s752_s2 = inlined_call_operand.hbm [shape: f32[2,8,32], index: 2, kind: input, shape index: {}, may-alias: {2,10}]   ;;  %s753_s3 = inlined_call_operand.hbm [shape: f32[2,64,128], index: 3, kind: input, shape index: {}]   ;;  %s754_s4 = inlined_call_operand.vmem [shape: f32[2,128], index: 4, kind: input, shape index: {}]   ;;  %s755_s5 = inlined_call_operand.vmem [shape: f32[32,128], index: 5, kind: input, shape index: {}]   ;;  %s756_s6 = inlined_call_operand.vmem [shape: f32[1,128], index: 6, kind: input, shape index: {}]   ;;  %s757_s7 = inlined_call_operand.hbm [shape: f32[1,8,128], index: 7, kind: output, shape index: {0}]   ;;  %s758_s8 = inlined_call_operand.hbm [shape: f32[1,8,128], index: 8, kind: output, shape index: {1}]   ;;  %s759_s9 = inlined_call_operand.hbm [shape: f32[2,8,32], index: 9, kind: output, shape index: {2}, may-alias: {1,9}]   ;;  %s760_s10 = inlined_call_operand.hbm [shape: f32[2,8,32], index: 10, kind: output, shape index: {3}, may-alias: {2,10}]  }
   0x1   :  { %17 = vsyncpa [#allocation6], 0 }
   0x2   :  { %18 = vsyncpa [#allocation4], 0 }
   0x3   :  { %19 = vsyncpa [#allocation10], 0 }
   0x4   :  { %20 = vsyncpa [#allocation13], 0  ;;  %s40_s15 = sshll.u32 %s752_s2, 4  ;;  %s597_s16 = smov [#allocation5]   ;;  %s41_s15 = int_to_ptr.hbm [resolvable:$true] %s40_s15 }
   0x5   :  { %s42_s17 = sshll.u32 %s597_s16, 4  ;;  %s27_s20 = sshll.u32 %s751_s1, 4  ;;  %s43_s17 = int_to_ptr.vmem [resolvable:$true] %s42_s17  ;;  %s28_s20 = int_to_ptr.hbm [resolvable:$true] %s27_s20 }
   0x6   :  { %s598_s21 = smov 128   ;;  %s599_s22 = smov 8  }
   0x7   :  { %48 = dma.hbm_to_vmem [thread:$0]  %s41_s15, 256, %s43_s17, [#allocation6], %s598_s21, %s598_s21, %s599_s22  }
   0x8   :  { %s600_s23 = smov [#allocation2]   ;;  %s53_s2 = sshll.u32 %s753_s3, 4  ;;  %s54_s2 = int_to_ptr.hbm [resolvable:$true] %s53_s2 }
   0x9   :  { %s29_s24 = sshll.u32 %s600_s23, 4  ;;  %s601_s1 = smov [#allocation7]   ;;  %s30_s24 = int_to_ptr.vmem [resolvable:$true] %s29_s24 }
   0xa   :  { %35 = dma.hbm_to_vmem [thread:$0]  %s28_s20, 256, %s30_s24, [#allocation3], %s598_s21, %s598_s21, %s599_s22  }
   0xb   :  { %s55_s27 = sshll.u32 %s601_s1, 4  ;;  %s56_s27 = int_to_ptr.vmem [resolvable:$true] %s55_s27 }
   0xc   :  { %61 = dma.hbm_to_vmem [thread:$0]  %s54_s2, 2048, %s56_s27, [#allocation6], %s598_s21, %s598_s21, %s599_s22  }
   0xd   :  { %587 = dma.done.wait [#allocation3], 256  }
   0xe   :  { %588 = vsyncadd [#allocation3], 4294967040 }
   0xf   :  { %589 = dma.done.wait [#allocation6], 2304  }
  0x10   :  { %590 = vsyncadd [#allocation6], 4294964992  ;;  %vm86_vm0 = vcmask 261120   ;;  %v84_v0 = vld [vmem:[#allocation2] sm:$0xff]  ;;  %v109_v1 = vld [vmem:[#allocation7 + $0x38] sm:$0xff]  ;;  %s602_s3 = smov 32  }
  0x11   :  { %v108_v2 = vld [vmem:[#allocation7 + $0x30] sm:$0xff]  ;;  %87 = vst.msk [vmem:[#allocation11] sm:$0xff] %vm86_vm0, %v84_v0  ;;  %124 = vmatpush.msra.mxu0 %v109_v1  ;;  %v107_v3 = vld [vmem:[#allocation7 + $0x28] sm:$0xff]  ;;  %v106_v4 = vld [vmem:[#allocation7 + $0x20] sm:$0xff]  ;;  %vm112_vm1 = vcmask 523264   ;;  %s603_s12 = smov 64  }
  0x12   :  { %v105_v5 = vld [vmem:[#allocation7 + $0x18] sm:$0xff]  ;;  %v104_v7 = vld [vmem:[#allocation7 + $0x10] sm:$0xff]  ;;  %v103_v8 = vld [vmem:[#allocation7 + $0x8] sm:$0xff]  ;;  %s605_s24 = smov [#allocation9]   ;;  %s332_s2 = sshll.u32 %s758_s8, 4  ;;  %s333_s2 = int_to_ptr.hbm [resolvable:$true] %s332_s2 }
  0x13   :  { %125 = vmatpush.msra.mxu0 %v108_v2  ;;  %v102_v9 = vld [vmem:[#allocation7] sm:$0xff]  ;;  %v89_v10 = vld [vmem:[#allocation5] sm:$0xff]  ;;  %v85_v34 = vld [vmem:[#allocation2 + $0x8] sm:$0xff]  ;;  %s330_s25 = sshll.u32 %s605_s24, 4  ;;  %s606_s1 = smov [#allocation11]   ;;  %s331_s25 = int_to_ptr.vmem [resolvable:$true] %s330_s25 }
  0x14   :  { %91 = vst.msk [vmem:[#allocation12] sm:$0xff] %vm86_vm0, %v89_v10  ;;  %v93_v12 = vld [vmem:[%s750_s0] sm:$0xff]  ;;  %v204_v41 = vld [vmem:[#allocation7 + $0x78] sm:$0xff]  ;;  %v203_v42 = vld [vmem:[#allocation7 + $0x70] sm:$0xff]  ;;  %s340_s27 = sshll.u32 %s606_s1, 4  ;;  %s342_s29 = sshll.u32 %s759_s9, 4  ;;  %s341_s27 = int_to_ptr.vmem [resolvable:$true] %s340_s27  ;;  %s343_s29 = int_to_ptr.hbm [resolvable:$true] %s342_s29 }
  0x15   :  { %126 = vmatpush.msra.mxu0 %v107_v3  ;;  %v400_v15 = vld [vmem:[%s754_s4] ss:$0 sm:$0xff]  ;;  %88 = vst.msk [vmem:[#allocation11 + $0x8] sm:$0xff] %vm86_vm0, %v85_v34  ;;  %218 = vmatpush.msra.mxu1 %v204_v41  ;;  %v202_v43 = vld [vmem:[#allocation7 + $0x68] sm:$0xff]  ;;  %v200_v45 = vld [vmem:[#allocation7 + $0x58] sm:$0xff]  ;;  %s607_s8 = smov [#allocation12]  }
  0x16   :  { %v201_v44 = vld [vmem:[#allocation7 + $0x60] sm:$0xff]  ;;  %v199_v46 = vld [vmem:[#allocation7 + $0x50] sm:$0xff]  ;;  %v198_v47 = vld [vmem:[#allocation7 + $0x48] sm:$0xff]  ;;  %s353_s0 = sshll.u32 %s607_s8, 4  ;;  %s321_s17 = sshll.u32 %s757_s7, 4  ;;  %s354_s0 = int_to_ptr.vmem [resolvable:$true] %s353_s0  ;;  %s322_s17 = int_to_ptr.hbm [resolvable:$true] %s321_s17 }
  0x17   :  { %127 = vmatpush.msra.mxu0 %v106_v4  ;;  %219 = vmatpush.msra.mxu1 %v203_v42  ;;  %v197_v50 = vld [vmem:[#allocation7 + $0x40] sm:$0xff]  ;;  %v90_v51 = vld [vmem:[#allocation5 + $0x8] sm:$0xff] }
  0x18   :  { %v94_v6 = vld [vmem:[#allocation11] sm:$0xff]  ;;  %92 = vst.msk [vmem:[#allocation12 + $0x8] sm:$0xff] %vm86_vm0, %v90_v51  ;;  %v401_v56 = vld [vmem:[%s754_s4 + $0x1] ss:$0 sm:$0xff]  ;;  %s604_s4 = smov 96  }
  0x19   :  { %97 = vrot.lane.b32.xlu0 %v94_v6, %s602_s3  ;;  %128 = vmatpush.msra.mxu0 %v105_v5 }
  0x1a   :  { %220 = vmatpush.msra.mxu1 %v202_v43 }
  0x1b   :  { %129 = vmatpush.msra.mxu0 %v104_v7  ;;  %v95_v11 = vld [vmem:[#allocation12] sm:$0xff] }
  0x1c   :  { %157 = vrot.lane.b32.xlu1 %v95_v11, %s602_s3  ;;  %v188_v35 = vld [vmem:[#allocation11 + $0x8] sm:$0xff]  ;;  %221 = vmatpush.msra.mxu1 %v201_v44 }
  0x1d   :  { %130 = vmatpush.msra.mxu0 %v103_v8 }
  0x1e   :  { %222 = vmatpush.msra.mxu1 %v200_v45 }
  0x1f   :  { %131 = vmatpush.msra.mxu0 %v102_v9  ;;  %v190_v52 = vld [vmem:[#allocation12 + $0x8] sm:$0xff] }
  0x20   :  { %223 = vmatpush.msra.mxu1 %v199_v46 }
  0x22   :  { %224 = vmatpush.msra.mxu1 %v198_v47 }
  0x24   :  { %225 = vmatpush.msra.mxu1 %v197_v50 }
  0x8b   :  { %v98_v13 = vpop.permute.xlu0 %97 }
  0x8c   :  { %v101_v14 = vsel %vm86_vm0, %v93_v12, %v98_v13 }
  0x8d   :  { %383 = vmatmul.msk.f32.vlgmr.msra.gmra.mxu0 %vm112_vm1, %v101_v14 }
  0x8e   :  { %v158_v36 = vpop.permute.xlu1 %157 }
 0x10a   :  { %v133_v16 = vpop.f32.mrf.mxu0 }
 0x10b   :  { %v134_v17 = vadd.f32 %v400_v15, %v133_v16 }
 0x10d   :  { %403 = vtanh.f32 %v134_v17  ;;  %v384_v19 = vmul.f32 -1.442695, %v134_v17  ;;  %v286_v17 = vld [vmem:[%s755_s5 + $0x18] sm:$0xff] }
 0x10e   :  { %305 = vmatpush.msra.mxu2 %v286_v17 }
 0x10f   :  { %405 = vpow2.f32 %v384_v19  ;;  %v284_v19 = vld [vmem:[%s755_s5 + $0x8] sm:$0xff] }
 0x113   :  { %v404_v18 = vpop.eup %403 }
 0x114   :  { %162 = vrot.lane.b32.xlu0 %v404_v18, %s603_s12  ;;  %v285_v18 = vld [vmem:[%s755_s5 + $0x10] sm:$0xff] }
 0x115   :  { %v406_v20 = vpop.eup %405  ;;  %306 = vmatpush.msra.mxu2 %v285_v18 }
 0x116   :  { %v139_v21 = vadd.f32 1.0, %v406_v20  ;;  %v283_v20 = vld [vmem:[%s755_s5] sm:$0xff] }
 0x117   :  { %307 = vmatpush.msra.mxu2 %v284_v19 }
 0x118   :  { %407 = vrcp.f32 %v139_v21  ;;  %v151_v27 = vand.u32 2147483648, %v139_v21  ;;  %vm145_vm3 = vweird.f32 %v139_v21  ;;  %v149_v28 = vand.u32 2147483647, %v139_v21 }
 0x119   :  { %308 = vmatpush.msra.mxu2 %v283_v20 }
 0x11a   :  { %v152_v30 = vor.u32 1.1754944e-38, %v151_v27  ;;  %vm150_vm5 = vcmp.eq.f32.partialorder %v149_v28, 8.507059e+37 }
 0x11c   :  { %192 = vrot.lane.b32.xlu0 %v188_v35, %s602_s3 }
 0x11e   :  { %v408_v22 = vpop.eup %407 }
 0x11f   :  { %v141_v23 = vmul.f32 %v408_v22, %v139_v21  ;;  %vm146_vm2 = vweird.f32 %v408_v22 }
 0x120   :  { %vm147_vm4 = vmor %vm145_vm3, %vm146_vm2 }
 0x121   :  { %v142_v24 = vsub.f32 1.0, %v141_v23 }
 0x123   :  { %v143_v25 = vmul.f32 %v408_v22, %v142_v24 }
 0x125   :  { %v144_v26 = vadd.f32 %v408_v22, %v143_v25 }
 0x127   :  { %v148_v29 = vsel %vm147_vm4, %v408_v22, %v144_v26  ;;  %v402_v26 = vld [vmem:[%s756_s6] ss:$0 sm:$0xff] }
 0x128   :  { %v153_v31 = vsel %vm150_vm5, %v152_v30, %v148_v29 }
 0x129   :  { %v160_v37 = vmul.f32 %v158_v36, %v153_v31 }
 0x186   :  { %v163_v32 = vpop.permute.xlu0 %162 }
 0x187   :  { %v165_v33 = vmul.f32 %v163_v32, %v153_v31 }
 0x189   :  { %167 = vrot.lane.b32.xlu1 %v165_v33, %s602_s3 }
 0x18e   :  { %v193_v53 = vpop.permute.xlu0 %192 }
 0x1fb   :  { %v168_v38 = vpop.permute.xlu1 %167 }
 0x1fc   :  { %v170_v39 = vadd.f32 %v168_v38, %v160_v37 }
 0x1fe   :  { %409 = vtanh.f32 %v170_v39 }
 0x204   :  { %v410_v40 = vpop.eup %409 }
 0x205   :  { %173 = vrot.lane.b32.xlu2 %v410_v40, %s603_s12 }
 0x25f   :  { %v174_v48 = vpop.permute.xlu2 %173 }
 0x260   :  { %v176_v49 = vmul.f32 %v174_v48, %v153_v31 }
 0x262   :  { %178 = vrot.lane.b32.xlu2 %v176_v49, %s602_s3 }
 0x26a   :  { %251 = vrot.lane.b32.xlu2 %v190_v52, %s602_s3 }
 0x2bc   :  { %v179_v54 = vpop.permute.xlu2 %178 }
 0x2bd   :  { %181 = vst.msk [vmem:[#allocation11] sm:$0xff] %vm86_vm0, %v179_v54  ;;  %v195_v55 = vsel %vm86_vm0, %v179_v54, %v193_v53 }
 0x2be   :  { %385 = vmatmul.msk.f32.vlgmr.msra.gmra.mxu1 %vm112_vm1, %v195_v55 }
 0x2c4   :  { %v252_v11 = vpop.permute.xlu2 %251 }
 0x33b   :  { %v227_v57 = vpop.f32.mrf.mxu1 }
 0x33c   :  { %v228_v58 = vadd.f32 %v401_v56, %v227_v57 }
 0x33e   :  { %411 = vtanh.f32 %v228_v58  ;;  %v386_v60 = vmul.f32 -1.442695, %v228_v58 }
 0x340   :  { %413 = vpow2.f32 %v386_v60 }
 0x344   :  { %v412_v59 = vpop.eup %411 }
 0x345   :  { %256 = vrot.lane.b32.xlu1 %v412_v59, %s603_s12 }
 0x346   :  { %v414_v61 = vpop.eup %413 }
 0x347   :  { %v233_v62 = vadd.f32 1.0, %v414_v61 }
 0x349   :  { %415 = vrcp.f32 %v233_v62  ;;  %v245_v4 = vand.u32 2147483648, %v233_v62  ;;  %vm239_vm7 = vweird.f32 %v233_v62  ;;  %v243_v5 = vand.u32 2147483647, %v233_v62 }
 0x34b   :  { %v246_v7 = vor.u32 1.1754944e-38, %v245_v4  ;;  %vm244_vm9 = vcmp.eq.f32.partialorder %v243_v5, 8.507059e+37 }
 0x34f   :  { %v416_v63 = vpop.eup %415 }
 0x350   :  { %v235_v0 = vmul.f32 %v416_v63, %v233_v62  ;;  %vm240_vm6 = vweird.f32 %v416_v63 }
 0x351   :  { %vm241_vm8 = vmor %vm239_vm7, %vm240_vm6 }
 0x352   :  { %v236_v1 = vsub.f32 1.0, %v235_v0 }
 0x354   :  { %v237_v2 = vmul.f32 %v416_v63, %v236_v1 }
 0x356   :  { %v238_v3 = vadd.f32 %v416_v63, %v237_v2 }
 0x358   :  { %v242_v6 = vsel %vm241_vm8, %v416_v63, %v238_v3 }
 0x359   :  { %v247_v8 = vsel %vm244_vm9, %v246_v7, %v242_v6 }
 0x35a   :  { %v254_v12 = vmul.f32 %v252_v11, %v247_v8 }
 0x3b7   :  { %v257_v9 = vpop.permute.xlu1 %256 }
 0x3b8   :  { %v259_v10 = vmul.f32 %v257_v9, %v247_v8 }
 0x3ba   :  { %261 = vrot.lane.b32.xlu0 %v259_v10, %s602_s3 }
 0x3c2   :  { %183 = vrot.lane.b32.xlu0 %v170_v39, %s604_s4 }
 0x42c   :  { %v262_v13 = vpop.permute.xlu0 %261 }
 0x42d   :  { %v264_v14 = vadd.f32 %v262_v13, %v254_v12 }
 0x42f   :  { %417 = vtanh.f32 %v264_v14 }
 0x434   :  { %v184_v15 = vpop.permute.xlu0 %183 }
 0x435   :  { %v418_v16 = vpop.eup %417  ;;  %186 = vst.msk [vmem:[#allocation12] sm:$0xff] %vm86_vm0, %v184_v15 }
 0x436   :  { %267 = vrot.lane.b32.xlu1 %v418_v16, %s603_s12  ;;  %s355_s12 = sshll.u32 %s760_s10, 4  ;;  %s356_s12 = int_to_ptr.hbm [resolvable:$true] %s355_s12 }
 0x43e   :  { %277 = vrot.lane.b32.xlu1 %v264_v14, %s604_s4  ;;  %s608_s4 = smov [#allocation8]  }
 0x43f   :  { %s319_s14 = sshll.u32 %s608_s4, 4  ;;  %s320_s14 = int_to_ptr.vmem [resolvable:$true] %s319_s14 }
 0x4a8   :  { %v268_v21 = vpop.permute.xlu1 %267 }
 0x4a9   :  { %v270_v22 = vmul.f32 %v268_v21, %v247_v8 }
 0x4ab   :  { %272 = vrot.lane.b32.xlu2 %v270_v22, %s602_s3 }
 0x4b0   :  { %v278_v23 = vpop.permute.xlu1 %277 }
 0x4b1   :  { %280 = vst.msk [vmem:[#allocation12 + $0x8] sm:$0xff] %vm86_vm0, %v278_v23 }
 0x4b2   :  { %361 = dma.vmem_to_hbm [thread:$0]  %s354_s0, 256, %s356_s12, [#allocation13], %s598_s21, %s598_s21, %s599_s22  }
 0x505   :  { %v273_v24 = vpop.permute.xlu2 %272 }
 0x506   :  { %275 = vst.msk [vmem:[#allocation11 + $0x8] sm:$0xff] %vm86_vm0, %v273_v24  ;;  %v281_v25 = vsel %vm86_vm0, %v273_v24, 0.0  ;;  %387 = vmatmul.msk.f32.vlgmr.msra.gmra.mxu2 %vm86_vm0, %v273_v24 }
 0x507   :  { %282 = vst [vmem:[#allocation9] sm:$0xff] %v281_v25 }
 0x508   :  { %335 = dma.vmem_to_hbm [thread:$0]  %s331_s25, 128, %s333_s2, [#allocation10]  }
 0x509   :  { %348 = dma.vmem_to_hbm [thread:$0]  %s341_s27, 256, %s343_s29, [#allocation10], %s598_s21, %s598_s21, %s599_s22  }
 0x589   :  { %v310_v27 = vpop.f32.mrf.mxu2 }
 0x58a   :  { %v311_v28 = vadd.f32 %v402_v26, %v310_v27 }
 0x58c   :  { %313 = vst [vmem:[#allocation8] sm:$0xff] %v311_v28 }
 0x58d   :  { %324 = dma.vmem_to_hbm [thread:$0]  %s320_s14, 128, %s322_s17, [#allocation4]  }
 0x58e   :  { %591 = dma.done.wait [#allocation4], 128  }
 0x58f   :  { %592 = vsyncadd [#allocation4], 4294967168 }
 0x590   :  { %593 = dma.done.wait [#allocation10], 384  }
 0x591   :  { %594 = vsyncadd [#allocation10], 4294966912 }
 0x592   :  { %595 = dma.done.wait [#allocation13], 256  }
 0x593   :  { %596 = vsyncadd [#allocation13], 4294967040 }
 0x594   :  { %378 = vsyncpa [#allocation3], 1 }
 0x595   :  { %379 = vsyncpa [#allocation6], 1 }
 0x596   :  { %380 = vsyncpa [#allocation4], 1 }
 0x597   :  { %381 = vsyncpa [#allocation10], 1 }
 0x598   :  { %382 = vsyncpa [#allocation13], 1 }

</bundles_post_ra>
